<compile_context>
chip_gen: v7x
topology: tpu7x:2x2x1
jax: 0.10.0
libtpu: 0.0.40
codegen_flags: <defaults>
</compile_context>

<pallas_src>
import math

import jax
import jax.numpy as jnp
import numpy as np
from jax.experimental import pallas as pl
from jax.experimental.pallas import tpu as pltpu


def _copy_kernel(x_ref, o_ref):
    # Identity copy of the current lane-dense tile.
    o_ref[...] = x_ref[...]


def _choose_chunking(total: int, n: int, feat: int, itemsize: int):
    """Pick a lane-dense (rows, lane) view of the flat buffer and block rows."""
    # Dtype-aware sublane multiple: 8 rows f32, 16 bf16, 32 int8/fp8.
    sublane = max(8, 32 // max(itemsize, 1))

    # Prefer the widest lane count that divides the total AND yields a row
    # count that is a sublane multiple; otherwise just the widest that divides.
    lane = None
    for cand in (2048, 1024, 512, 256, 128):
        if total % cand == 0 and (total // cand) % sublane == 0:
            lane = cand
            break
    if lane is None:
        for cand in (2048, 1024, 512, 256, 128):
            if total % cand == 0:
                lane = cand
                break
    if lane is None:
        # Awkward size: fall back to the (n, feat) layout with full-array
        # block dims (always legal).
        # TODO(synk): very large awkward shapes would need ragged-edge tiling.
        return n, max(feat, 1), n

    rows = total // lane

    # Target ~2 MiB per block (v7x-safe: 2x double-buffered input + output
    # stays well under the 32 MiB scoped-VMEM default on a 64 MiB part).
    target_rows = max(sublane, (2 * 1024 * 1024) // (lane * itemsize))
    target_rows = (target_rows // sublane) * sublane

    if rows <= target_rows:
        block_rows = rows            # single fat block, grid = (1,)
    else:
        block_rows = target_rows     # sublane-multiple blocks; Pallas pads the
                                     # ragged last block if rows % block_rows != 0
    return rows, lane, block_rows


@jax.jit
def flatten_pallas(x: jax.Array) -> jax.Array:
    """Equivalent of torch's x.view(x.shape[0], -1) for any rank >= 1."""
    n = x.shape[0]
    feat = math.prod(x.shape[1:]) if x.ndim > 1 else 1
    total = n * feat
    itemsize = jnp.dtype(x.dtype).itemsize

    rows, lane, block_rows = _choose_chunking(total, n, feat, itemsize)

    # Metadata-only for a row-major contiguous array (matches torch .view).
    flat = x.reshape(rows, lane)

    grid = (pl.cdiv(rows, block_rows),)

    out = pl.pallas_call(
        _copy_kernel,
        out_shape=jax.ShapeDtypeStruct((rows, lane), x.dtype),
        grid_spec=pltpu.PrefetchScalarGridSpec(
            num_scalar_prefetch=0,
            grid=grid,
            in_specs=[pl.BlockSpec((block_rows, lane), lambda i: (i, 0))],
            out_specs=pl.BlockSpec((block_rows, lane), lambda i: (i, 0)),
        ),
        compiler_params=pltpu.CompilerParams(
            dimension_semantics=("parallel",),
        ),
        # Let XLA reuse the operand buffer for the output (no second HBM
        # allocation); XLA inserts a protective copy only if it can't alias.
        input_output_aliases={0: 0},
    )(flat)

    return out.reshape(n, feat)


if __name__ == "__main__":
    key = jax.random.PRNGKey(0)
    # NCHW input, small shapes: batch=2, channels=4, spatial=16x16
    x = jax.random.normal(key, (2, 4, 16, 16), dtype=jnp.float32)

    # Materialize the reference on host BEFORE the (potentially aliasing)
    # kernel call so the comparison cannot be affected by buffer donation.
    y_ref = np.asarray(x).reshape(x.shape[0], -1)

    y = flatten_pallas(x)
    jax.block_until_ready(y)

    assert y.shape == (2, 4 * 16 * 16), y.shape
    assert np.array_equal(np.asarray(y), y_ref), "mismatch vs reference flatten"

    print("KERNEL_OK")
</pallas_src>

<mosaic_0001>
module attributes {stable_mosaic.version = 11 : i64} {
  func.func @_copy_kernel(%arg0: i32, %arg1: memref<8x256xf32, #tpu.memory_space<vmem>>, %arg2: memref<8x256xf32, #tpu.memory_space<vmem>>) attributes {dimension_semantics = [#tpu.dimension_semantics<parallel>], iteration_bounds = array<i64: 1>, scalar_prefetch = 0 : i64, scratch_operands = 0 : i64, tpu.core_type = #tpu.core_type<tc>, window_params = [{transform_indices = @transform_0, window_bounds = array<i64: 8, 256>}, {transform_indices = @transform_1, window_bounds = array<i64: 8, 256>}]} {
    %c0 = arith.constant 0 : index
    %c0_0 = arith.constant 0 : index
    %0 = vector.load %arg1[%c0, %c0_0] : memref<8x256xf32, #tpu.memory_space<vmem>>, vector<8x256xf32>
    %c0_1 = arith.constant 0 : index
    %c0_2 = arith.constant 0 : index
    %1 = vector.load %arg2[%c0_1, %c0_2] : memref<8x256xf32, #tpu.memory_space<vmem>>, vector<8x256xf32>
    tpu.vector_store %arg2[%c0_1, %c0_2], %0 {strides = array<i32>} : memref<8x256xf32, #tpu.memory_space<vmem>>, vector<8x256xf32>,
    return
  }
  func.func @transform_0(%arg0: i32) -> (i32, i32) {
    %c0_i32 = arith.constant 0 : i32
    %c0_i32_0 = arith.constant 0 : i32
    return %arg0, %c0_i32 : i32, i32
  }
  func.func @transform_1(%arg0: i32) -> (i32, i32) {
    %c0_i32 = arith.constant 0 : i32
    %c0_i32_0 = arith.constant 0 : i32
    return %arg0, %c0_i32 : i32, i32
  }
}

</mosaic_0001>

<bundles_post_ra>
// kernel: flatten_pallas.1
= control target key start
LH: loop header
LB: loop body
LE: loop exit
PB: predicated region body
PF: predicated region fallthrough
CT: control target
= control target key end

     0   :  { %s38_s0 = inlined_call_operand.vmem [shape: f32[8,256], index: 0, kind: input, shape index: {}, may-alias: {0,1}]   ;;  %s39_s1 = inlined_call_operand.vmem [shape: f32[8,256], index: 1, kind: output, shape index: {}, may-alias: {0,1}]  }
   0x1   :  { %v8_v0 = vld [vmem:[%s38_s0] sm:$0xff]  ;;  %v9_v1 = vld [vmem:[%s38_s0 + $0x8] sm:$0xff] }
   0x2   :  { %10 = vst [vmem:[%s39_s1] sm:$0xff] %v8_v0  ;;  %11 = vst [vmem:[%s39_s1 + $0x8] sm:$0xff] %v9_v1 }

</bundles_post_ra>
